<compile_context>
chip_gen: v6e
topology: v6e:2x2x1
jax: 0.10.0
libtpu: 0.0.40
codegen_flags: <defaults>
</compile_context>

<pallas_src>
import functools

import jax
import jax.numpy as jnp
import numpy as np
from jax.experimental import pallas as pl
from jax.experimental.pallas import tpu as pltpu


def _kv_proj_kernel(x_ref, wkv_ref, bkv_ref, k_ref, v_ref, *, c8):
    """Fused K/V 1x1-conv projection for one (batch, seq-tile): [k; v] = W_kv @ x + b."""
    x_t = x_ref[...].astype(wkv_ref.dtype)      # one cast per tile (outside any hot loop)
    kv = jnp.dot(wkv_ref[...], x_t, preferred_element_type=jnp.float32) + bkv_ref[...]
    k_ref[...] = kv[:c8, :].astype(k_ref.dtype)     # (C8, T) -- sublane-aligned split
    v_ref[...] = kv[c8:, :].astype(v_ref.dtype)     # (C,  T)


def _attention_kernel(x_q_ref, k_ref, v_ref, wq_ref, bq_ref, g_ref, o_ref,
                      q_sc, m_sc, l_sc, acc_sc, *, l_valid, tk, masked):
    """One (batch, q-tile, kv-tile) flash step, channels-first (NCL) layout.

    x_q_ref : (C, TQ)  f32   query-rows tile of x (also the residual)
    k_ref   : (C8, TK) bf16  pre-projected keys for this kv tile
    v_ref   : (C, TK)  bf16  pre-projected values for this kv tile
    wq_ref  : (C8, C)  bf16  bq_ref: (C8, 1) f32   g_ref: (1, 1) f32 in SMEM
    o_ref   : (C, TQ)  f32
    scratch : q_sc (C8, TQ) bf16, m_sc/l_sc (1, TQ) f32, acc_sc (C, TQ) f32
    """
    ki = pl.program_id(2)
    n_kv = pl.num_programs(2)

    @pl.when(ki == 0)
    def _init():
        # Project this query tile once per (b, qi) and cache it in MXU dtype;
        # reset the online-softmax running state.  (Guarded on ki, the
        # "arbitrary" axis -- safe under megacore sharding of b / qi.)
        q = (jnp.dot(wq_ref[...], x_q_ref[...].astype(wq_ref.dtype),
                     preferred_element_type=jnp.float32)
             + bq_ref[...])
        q_sc[...] = q.astype(q_sc.dtype)
        m_sc[...] = jnp.full(m_sc.shape, -jnp.inf, dtype=jnp.float32)
        l_sc[...] = jnp.zeros(l_sc.shape, dtype=jnp.float32)
        acc_sc[...] = jnp.zeros(acc_sc.shape, dtype=jnp.float32)

    # att_t[j, i] = <k_j, q_i>: keys on sublanes, queries on lanes.  Contraction
    # over C8 via dot_general -- no transposed copy materialized (at C8 = C/8
    # the k operand is a handful of vregs; re-check the lowered MLIR if C grows).
    att_t = jax.lax.dot_general(
        k_ref[...], q_sc[...], (((0,), (0,)), ((), ())),
        preferred_element_type=jnp.float32)                                # (TK, TQ)

    if masked:
        # Zero-padded key positions (>= true L) are excluded with a large
        # negative logit; only the last kv tile actually has any.
        key_idx = ki * tk + jax.lax.broadcasted_iota(jnp.int32, att_t.shape, 0)
        att_t = jnp.where(key_idx < l_valid, att_t, -1e30)

    # Online softmax over the key axis (axis 0), all state in f32.
    m_new = jnp.maximum(m_sc[...], jnp.max(att_t, axis=0, keepdims=True))  # (1, TQ)
    alpha = jnp.exp(m_sc[...] - m_new)                                     # (1, TQ)
    p_t = jnp.exp(att_t - m_new)                                           # (TK, TQ)
    l_sc[...] = alpha * l_sc[...] + jnp.sum(p_t, axis=0, keepdims=True)
    acc_sc[...] = alpha * acc_sc[...] + jnp.dot(
        v_ref[...], p_t.astype(v_ref.dtype),
        preferred_element_type=jnp.float32)                                # (C, TQ)
    m_sc[...] = m_new

    @pl.when(ki == n_kv - 1)
    def _finalize():
        # Exact normalization (the approx reciprocal caused the previous
        # tolerance failure); residual add stays in f32.
        out = acc_sc[...] / l_sc[...]                                      # (C, TQ)
        o_ref[...] = (g_ref[0, 0] * out + x_q_ref[...]).astype(o_ref.dtype)


def space_projection(x, wq, bq, wk, bk, wv, bv, gamma, *,
                     tile=None, mxu_dtype=jnp.bfloat16):
    """x: (B, C, L) f32.  Conv1d(k=1) weights in (out_ch, in_ch) layout.

    Returns (B, C, L) matching the PyTorch SpaceProjection forward.
    `mxu_dtype=jnp.bfloat16` (default) uses bf16 matmul operands with f32
    accumulation; pass jnp.float32 for bit-for-bit-tighter numerics.
    """
    B, C, L = x.shape
    assert C % 8 == 0, "in_dim must be divisible by 8 (Conv1d out_channels = C // 8)"
    C8 = C // 8

    if tile is None:
        # Prefer 256-wide tiles (fill the 2x256^2 MXU on v6e/v7x, quarter the
        # grid-step overhead); fall back to 128 when it avoids padding waste or
        # for short sequences.  On v5e (4x128^2 MXU) pass tile=128 explicitly.
        if L % 256 == 0 or L >= 1024:
            tile = 256
        elif L % 128 == 0 or L < 256:
            tile = 128
        else:
            tile = 256
    TQ = TK = tile
    L_pad = ((L + tile - 1) // tile) * tile
    n_q = L_pad // TQ
    n_kv = L_pad // TK
    masked = (L_pad != L)

    x_in = jnp.pad(x, ((0, 0), (0, 0), (0, L_pad - L))) if masked else x

    # Weight prep: pre-cast to the MXU dtype in the wrapper (no per-step casts
    # in-kernel); biases and gamma stay f32.
    wq_mx = wq.astype(mxu_dtype)
    bq2 = bq.reshape(-1, 1).astype(jnp.float32)                    # (C8, 1)
    wkv = jnp.concatenate([wk, wv], axis=0).astype(mxu_dtype)      # (C8 + C, C)
    bkv = jnp.concatenate([bk, bv]).reshape(-1, 1).astype(jnp.float32)
    g2 = gamma.reshape(1, 1).astype(jnp.float32)

    bf32 = 4
    bmx = jnp.dtype(mxu_dtype).itemsize

    # ---- Pass 1: fused K/V projection (each x position projected exactly once). ----
    proj_vmem_est = (2 * C * TK * bf32                              # x tile (dbl buf)
                     + 2 * ((C8 + C) * C * bmx + (C8 + C) * bf32)   # [Wk;Wv], [bk;bv]
                     + 2 * (C8 + C) * TK * bmx                      # k/v out tiles
                     + (C8 + C) * TK * bf32)                        # in-body f32 temp
    # 48 MiB cap is safe on every gen incl. v7x (64 MiB physical); on v6e with
    # very large C/L this can be raised towards 96 MiB.
    proj_vmem = int(min(max(2 * proj_vmem_est, 4 << 20), 48 << 20))
    proj_cost = pl.CostEstimate(
        flops=int(B * 2 * L_pad * C * (C8 + C)),
        transcendentals=0,
        bytes_accessed=int(B * C * L_pad * bf32
                           + (C8 + C) * (C + 1) * bf32
                           + B * (C8 + C) * L_pad * bmx))

    k_arr, v_arr = pl.pallas_call(
        functools.partial(_kv_proj_kernel, c8=C8),
        out_shape=(jax.ShapeDtypeStruct((B, C8, L_pad), mxu_dtype),
                   jax.ShapeDtypeStruct((B, C, L_pad), mxu_dtype)),
        grid_spec=pltpu.PrefetchScalarGridSpec(
            num_scalar_prefetch=0,
            grid=(B, n_kv),
            in_specs=[
                pl.BlockSpec((None, C, TK), lambda b, ki: (b, 0, ki)),   # x
                pl.BlockSpec((C8 + C, C), lambda b, ki: (0, 0)),         # [Wk; Wv]
                pl.BlockSpec((C8 + C, 1), lambda b, ki: (0, 0)),         # [bk; bv]
            ],
            out_specs=(
                pl.BlockSpec((None, C8, TK), lambda b, ki: (b, 0, ki)),  # k
                pl.BlockSpec((None, C, TK), lambda b, ki: (b, 0, ki)),   # v
            ),
        ),
        compiler_params=pltpu.CompilerParams(
            dimension_semantics=("parallel", "parallel"),
            vmem_limit_bytes=proj_vmem),
        cost_estimate=proj_cost,
    )(x_in, wkv, bkv)

    # ---- Pass 2: flash attention + gamma-scaled residual, NCL-native tiles. ----
    attn_vmem_est = (2 * C * TQ * bf32                              # x query tile
                     + 2 * (C8 + C) * TK * bmx                      # k, v tiles
                     + 2 * C * TQ * bf32                            # out tile
                     + 2 * (C8 * C * bmx + C8 * bf32)               # Wq, bq
                     + C8 * TQ * bmx + (2 + C) * TQ * bf32          # q/m/l/acc scratch
                     + 3 * TK * TQ * bf32)                          # att/exp temps
    attn_vmem = int(min(max(2 * attn_vmem_est, 4 << 20), 48 << 20))
    attn_cost = pl.CostEstimate(
        flops=int(B * (2 * L_pad * C * C8            # q projection
                       + 2 * L_pad * L_pad * C8      # q @ k
                       + 2 * L_pad * L_pad * C)),    # v @ p
        transcendentals=int(B * L_pad * L_pad),
        bytes_accessed=int(2 * B * C * L_pad * bf32                 # x read + out write
                           + n_q * B * (C8 + C) * L_pad * bmx       # k/v re-read per q tile
                           + (C8 * (C + 1) + 1) * bf32))

    out = pl.pallas_call(
        functools.partial(_attention_kernel, l_valid=L, tk=TK, masked=masked),
        out_shape=jax.ShapeDtypeStruct((B, C, L_pad), x.dtype),
        grid_spec=pltpu.PrefetchScalarGridSpec(
            num_scalar_prefetch=0,
            grid=(B, n_q, n_kv),
            in_specs=[
                pl.BlockSpec((None, C, TQ), lambda b, qi, ki: (b, 0, qi)),   # x (resident over ki)
                # If profiles show exposed DMA waits at small C, add
                # pipeline_mode=pl.Buffered(3) to the k/v specs below.
                pl.BlockSpec((None, C8, TK), lambda b, qi, ki: (b, 0, ki)),  # k
                pl.BlockSpec((None, C, TK), lambda b, qi, ki: (b, 0, ki)),   # v
                pl.BlockSpec((C8, C), lambda b, qi, ki: (0, 0)),             # Wq
                pl.BlockSpec((C8, 1), lambda b, qi, ki: (0, 0)),             # bq
                pl.BlockSpec(memory_space=pltpu.MemorySpace.SMEM),           # gamma
            ],
            out_specs=pl.BlockSpec((None, C, TQ), lambda b, qi, ki: (b, 0, qi)),
            scratch_shapes=[
                pltpu.VMEM((C8, TQ), mxu_dtype),    # cached projected query tile
                pltpu.VMEM((1, TQ), jnp.float32),   # running max
                pltpu.VMEM((1, TQ), jnp.float32),   # running sum
                pltpu.VMEM((C, TQ), jnp.float32),   # output accumulator
            ],
        ),
        compiler_params=pltpu.CompilerParams(
            dimension_semantics=("parallel", "parallel", "arbitrary"),
            vmem_limit_bytes=attn_vmem),
        cost_estimate=attn_cost,
    )(x_in, k_arr, v_arr, wq_mx, bq2, g2)

    return out[:, :, :L] if masked else out


def space_projection_ref(x, wq, bq, wk, bk, wv, bv, gamma):
    """Pure-JAX (f32) mirror of the PyTorch forward, NCL layout throughout."""
    q = jnp.einsum('oc,bcl->bol', wq, x) + bq[None, :, None]   # (B, C8, L)
    k = jnp.einsum('oc,bcl->bol', wk, x) + bk[None, :, None]   # (B, C8, L)
    v = jnp.einsum('oc,bcl->bol', wv, x) + bv[None, :, None]   # (B, C,  L)
    query = jnp.transpose(q, (0, 2, 1))                        # (B, L, C8)
    att = jnp.einsum('blc,bcm->blm', query, k)                 # (B, L, L)
    score = jax.nn.softmax(att, axis=-1)
    out = jnp.einsum('bcl,bml->bcm', v, score)                 # value @ score^T
    return gamma.reshape(()) * out + x


if __name__ == "__main__":
    # in_dim = 64 -> q/k project to 64 // 8 = 8 channels.  L = 320 with the
    # default 256-wide tiles pads to 512, giving a 2x2 (q-tile x kv-tile) grid:
    # this exercises the online-softmax accumulation AND the pad + key-mask
    # path (padded keys 320..511 are masked out in-kernel).
    B, C, L = 2, 64, 320
    C8 = C // 8

    key = jax.random.PRNGKey(0)
    ks = jax.random.split(key, 7)
    x = jax.random.normal(ks[0], (B, C, L), dtype=jnp.float32)

    # Conv1d(kernel_size=1) weights stored as (out_channels, in_channels).
    wq = jax.random.normal(ks[1], (C8, C), dtype=jnp.float32) * 0.1
    bq = jax.random.normal(ks[2], (C8,), dtype=jnp.float32) * 0.1
    wk = jax.random.normal(ks[3], (C8, C), dtype=jnp.float32) * 0.1
    bk = jax.random.normal(ks[4], (C8,), dtype=jnp.float32) * 0.1
    wv = jax.random.normal(ks[5], (C, C), dtype=jnp.float32) * 0.1
    bv = jax.random.normal(ks[6], (C,), dtype=jnp.float32) * 0.1
    # Module inits gamma = 0; use a nonzero value so the attention path
    # actually contributes to the output in this synthetic test.
    gamma = jnp.asarray([0.5], dtype=jnp.float32)

    out = space_projection(x, wq, bq, wk, bk, wv, bv, gamma)
    out = jax.block_until_ready(out)

    ref = space_projection_ref(x, wq, bq, wk, bk, wv, bv, gamma)
    # bf16 MXU operands with f32 accumulation vs. a pure-f32 reference: standard
    # flash-attention bf16 tolerance.  The softmax normalization itself is now
    # exact (the previous failure came from the approx reciprocal, removed).
    np.testing.assert_allclose(np.asarray(out), np.asarray(ref),
                               rtol=2e-2, atol=2e-2)
    print("KERNEL_OK")
</pallas_src>

<mosaic_0001>
module attributes {stable_mosaic.version = 11 : i64} {
  func.func @_kv_proj_kernel(%arg0: i32, %arg1: i32, %arg2: memref<1x64x256xf32, #tpu.memory_space<vmem>>, %arg3: memref<72x64xbf16, #tpu.memory_space<vmem>>, %arg4: memref<72x1xf32, #tpu.memory_space<vmem>>, %arg5: memref<1x8x256xbf16, #tpu.memory_space<vmem>>, %arg6: memref<1x64x256xbf16, #tpu.memory_space<vmem>>) attributes {dimension_semantics = [#tpu.dimension_semantics<parallel>, #tpu.dimension_semantics<parallel>], iteration_bounds = array<i64: 2, 2>, scalar_prefetch = 0 : i64, scratch_operands = 0 : i64, tpu.core_type = #tpu.core_type<tc>, window_params = [{transform_indices = @transform_0, window_bounds = array<i64: 1, 64, 256>}, {pipeline_mode = #tpu.pipeline_mode<synchronous>, transform_indices = @transform_1, window_bounds = array<i64: 72, 64>}, {pipeline_mode = #tpu.pipeline_mode<synchronous>, transform_indices = @transform_2, window_bounds = array<i64: 72, 1>}, {transform_indices = @transform_3, window_bounds = array<i64: 1, 8, 256>}, {transform_indices = @transform_4, window_bounds = array<i64: 1, 64, 256>}]} {
    %c0 = arith.constant 0 : index
    %c0_0 = arith.constant 0 : index
    %c0_1 = arith.constant 0 : index
    %0 = vector.load %arg2[%c0, %c0_0, %c0_1] : memref<1x64x256xf32, #tpu.memory_space<vmem>>, vector<1x64x256xf32>
    %1 = vector.shape_cast %0 : vector<1x64x256xf32> to vector<64x256xf32>
    %2 = arith.truncf %1 : vector<64x256xf32> to vector<64x256xbf16>
    %c0_2 = arith.constant 0 : index
    %c0_3 = arith.constant 0 : index
    %3 = vector.load %arg3[%c0_2, %c0_3] : memref<72x64xbf16, #tpu.memory_space<vmem>>, vector<72x64xbf16>
    %cst = arith.constant dense<0.000000e+00> : vector<72x256xf32>
    %4 = tpu.matmul %3, %2, %cst {dimension_numbers = #tpu.dot_dimension_numbers<[1], [0], [0], [1], [0, 0, 1, 1], [], []>} : vector<72x64xbf16>, vector<64x256xbf16>, vector<72x256xf32> -> vector<72x256xf32>
    %c0_4 = arith.constant 0 : index
    %c0_5 = arith.constant 0 : index
    %5 = vector.load %arg4[%c0_4, %c0_5] : memref<72x1xf32, #tpu.memory_space<vmem>>, vector<72x1xf32>
    %6 = vector.broadcast %5 : vector<72x1xf32> to vector<72x256xf32>
    %7 = arith.addf %4, %6 : vector<72x256xf32>
    %8 = vector.extract_strided_slice %7 {offsets = [0, 0], sizes = [8, 256], strides = [1, 1]} : vector<72x256xf32> to vector<8x256xf32>
    %9 = arith.truncf %8 : vector<8x256xf32> to vector<8x256xbf16>
    %c0_6 = arith.constant 0 : index
    %c0_7 = arith.constant 0 : index
    %c0_8 = arith.constant 0 : index
    %10 = vector.load %arg5[%c0_6, %c0_7, %c0_8] : memref<1x8x256xbf16, #tpu.memory_space<vmem>>, vector<1x8x256xbf16>
    %11 = vector.shape_cast %10 : vector<1x8x256xbf16> to vector<8x256xbf16>
    %12 = vector.shape_cast %9 : vector<8x256xbf16> to vector<1x8x256xbf16>
    tpu.vector_store %arg5[%c0_6, %c0_7, %c0_8], %12 {strides = array<i32>} : memref<1x8x256xbf16, #tpu.memory_space<vmem>>, vector<1x8x256xbf16>,
    %13 = vector.extract_strided_slice %7 {offsets = [8, 0], sizes = [64, 256], strides = [1, 1]} : vector<72x256xf32> to vector<64x256xf32>
    %14 = arith.truncf %13 : vector<64x256xf32> to vector<64x256xbf16>
    %c0_9 = arith.constant 0 : index
    %c0_10 = arith.constant 0 : index
    %c0_11 = arith.constant 0 : index
    %15 = vector.load %arg6[%c0_9, %c0_10, %c0_11] : memref<1x64x256xbf16, #tpu.memory_space<vmem>>, vector<1x64x256xbf16>
    %16 = vector.shape_cast %15 : vector<1x64x256xbf16> to vector<64x256xbf16>
    %17 = vector.shape_cast %14 : vector<64x256xbf16> to vector<1x64x256xbf16>
    tpu.vector_store %arg6[%c0_9, %c0_10, %c0_11], %17 {strides = array<i32>} : memref<1x64x256xbf16, #tpu.memory_space<vmem>>, vector<1x64x256xbf16>,
    return
  }
  func.func @transform_0(%arg0: i32, %arg1: i32) -> (i32, i32, i32) {
    %c0_i32 = arith.constant 0 : i32
    %c0_i32_0 = arith.constant 0 : i32
    return %arg0, %c0_i32, %arg1 : i32, i32, i32
  }
  func.func @transform_1(%arg0: i32, %arg1: i32) -> (i32, i32) {
    %c0_i32 = arith.constant 0 : i32
    %c0_i32_0 = arith.constant 0 : i32
    %c0_i32_1 = arith.constant 0 : i32
    return %c0_i32, %c0_i32_0 : i32, i32
  }
  func.func @transform_2(%arg0: i32, %arg1: i32) -> (i32, i32) {
    %c0_i32 = arith.constant 0 : i32
    %c0_i32_0 = arith.constant 0 : i32
    %c0_i32_1 = arith.constant 0 : i32
    return %c0_i32, %c0_i32_0 : i32, i32
  }
  func.func @transform_3(%arg0: i32, %arg1: i32) -> (i32, i32, i32) {
    %c0_i32 = arith.constant 0 : i32
    %c0_i32_0 = arith.constant 0 : i32
    return %arg0, %c0_i32, %arg1 : i32, i32, i32
  }
  func.func @transform_4(%arg0: i32, %arg1: i32) -> (i32, i32, i32) {
    %c0_i32 = arith.constant 0 : i32
    %c0_i32_0 = arith.constant 0 : i32
    return %arg0, %c0_i32, %arg1 : i32, i32, i32
  }
}

</mosaic_0001>

<bundles_post_ra>
// kernel: tpu_custom_call.1
= control target key start
LH: loop header
LB: loop body
LE: loop exit
PB: predicated region body
PF: predicated region fallthrough
CT: control target
= control target key end

     0   :  { %10 = vsyncpa [#allocation3], 0  ;;  %s1333_s0 = inlined_call_operand.hbm [shape: f32[2,64,512], index: 0, kind: input, shape index: {}]   ;;  %s1334_s1 = inlined_call_operand.vmem [shape: bf16[72,64], index: 1, kind: input, shape index: {}]   ;;  %s1335_s2 = inlined_call_operand.vmem [shape: f32[72,1], index: 2, kind: input, shape index: {}]   ;;  %s1336_s3 = inlined_call_operand.hbm [shape: bf16[2,8,512], index: 3, kind: output, shape index: {0}]   ;;  %s1337_s4 = inlined_call_operand.hbm [shape: bf16[2,64,512], index: 4, kind: output, shape index: {1}]  }
   0x1   :  { %12 = vsyncpa [#allocation3 + $0x1], 0 }
   0x2   :  { %13 = vsyncpa [#allocation4], 0 }
   0x3   :  { %15 = vsyncpa [#allocation4 + $0x1], 0 }
   0x4   :  { %16 = vsyncpa [#allocation7], 0 }
   0x5   :  { %18 = vsyncpa [#allocation7 + $0x1], 0  ;;  %s1031_s15 = smov 0   ;;  %s1033_s16 = smov 0  }
   0x6   :  { %s1035_s17 = smov 0   ;;  %s1037_s18 = smov 0  }
   0x7   :  { %s1039_s19 = smov 0   ;;  %s1041_s20 = smov 0  }
   0x8   :  { %s1043_s21 = smov 0   ;;  %s1045_s22 = smov 0  }
   0x9 LB: > { %1341 = sst [smem:[#allocation11_spill]] %s990_s21  ;;  %s685_s23 = sadd.s32 4294967295, %s994_s22   ;;  %s994_s22 = sphi %s1045_s22, %s24_s22   ;;  %s990_s21 = sphi %s1043_s21, %s1351_s21   ;;  %s986_s20 = sphi %s1041_s20, %s1356_s20   ;;  %s982_s19 = sphi %s1039_s19, %s1349_s19   ;;  %s978_s18 = sphi %s1037_s18, %s1355_s18   ;;  %s974_s17 = sphi %s1035_s17, %s1354_s17   ;;  %s970_s16 = sphi %s1033_s16, %s1353_s16   ;;  %s966_s15 = sphi %s1031_s15, %s1352_s15  }
   0xa   : > { %s686_s24 = sadd.s32 4294967294, %s994_s22   ;;  %s33_s25 = sadd.s32 1, %s986_s20 }
   0xb   : > { %s36_s26 = sadd.s32 1, %s990_s21  ;;  %p34_p0 = scmp.ge.s32.totalorder %s33_s25, 2 }
   0xc   : > { %s45_s27 = sadd.s32 1, %s974_s17  ;;  %p52_p1 = scmp.ne.s32.totalorder %s974_s17, %s970_s16 }
   0xd   : > { %p53_p2 = scmp.eq.s32.totalorder %s994_s22, 0  ;;  %s1358_s25 = smov (%p34_p0, %s33_s25), 0 }
   0xe   : > { %1342 = sst [smem:[#allocation12_spill]] %s1358_s25  ;;  %s1360_s26 = smov (!%p34_p0, %s36_s26), %s990_s21 }
   0xf   : > { %s41_s28 = ssub.s32 %s986_s20, %s1358_s25  ;;  %p1084_p3 = por %p53_p2, %p52_p1 }
  0x10   : > { %p38_p4 = scmp.ge.s32.totalorder %s1360_s26, 2  ;;  %p58_p5 = scmp.ne.s32.totalorder %s970_s16, %s966_s15 }
  0x11   : > { %p59_p6 = scmp.eq.s32.totalorder %s685_s23, 0  ;;  %p126_p7 = scmp.eq.s32.totalorder %s685_s23, 3 }
  0x12   : > { %s1362_s26 = smov (%p38_p4, %s1360_s26), 0  ;;  %p132_p10 = scmp.eq.s32.totalorder %s686_s24, 3 }
  0x13   : > { %1344 = sst [smem:[#allocation13_spill]] %s1362_s26  ;;  %p1092_p8 = por %p59_p6, %p58_p5 }
  0x14   : > { %p1096_p9 = por %p126_p7, %p52_p1  ;;  %s40_s6 = ssub.s32 %s990_s21, %s1362_s26 }
  0x15   : > { %s42_s7 = sor.u32 %s41_s28, %s40_s6  ;;  %p1102_p12 = por %p132_p10, %p58_p5 }
  0x16   : > { %p43_p11 = scmp.eq.s32.totalorder %s42_s7, 0  ;;  %p760_p13 = scmp.lt.s32.totalorder %s994_s22, 4 }
  0x17   : > { %s186_s9 = sand.u32 1, %s974_s17   ;;  %s690_s12 = sshll.u32 %s986_s20, 1 }
  0x18   : > { %s1109_s10 = scalar_select %p43_p11, %s974_s17, %s45_s27  }
  0x19   : > { %s689_s11 = sshll.u32 %s186_s9, 7  ;;  %s691_s13 = sshll.u32 %s990_s21, 5 }
  0x1a   : > { %s190_s14 = scalar_lea.vmem [#allocation2], %s689_s11  ;;  %s196_s25 = sadd.s32 %s691_s13, %s690_s12 }
  0x1b   : > { %s199_s23 = sshll.u32 %s190_s14, 4  ;;  %s692_s26 = sshll.u32 %s196_s25, 7  ;;  %s200_s23 = int_to_ptr.vmem [resolvable:$true] %s199_s23 }
  0x1c   : > { %p1115_p0 = pnand %p760_p13, %p1084_p3  ;;  %s198_s7 = scalar_lea.hbm %s1333_s0, %s692_s26 }
  0x1d   : > { %p693_p1 = scmp.ge.s32.totalorder %s994_s22, 1  ;;  %s187_s27 = scalar_lea.sflag [#allocation3], %s186_s9 }
  0x1e   : > { %p842_p2 = pneg %p1115_p0  ;;  %s853_s21 = scalar_lea.vmem %s200_s23, 2048 }
  0x1f   : > { %p854_p4 = scmp.ne.s32.totalorder %s200_s23, %s853_s21  ;;  %s996_s11 = smov [#allocation2]  }
  0x20   : > { %s858_s25 = sshll.u32 %s996_s11, 4  ;;  %s859_s25 = int_to_ptr.vmem [resolvable:$false] %s858_s25 }
  0x21   : > { %p856_p5 = pnand %p854_p4, %p842_p2  ;;  %s860_s29 = scalar_lea.vmem %s859_s25, 4096 }
  0x22   : > { %p861_p3 = scmp.lt.s32.totalorder %s200_s23, %s859_s25  ;;  %p862_p7 = scmp.lt.s32.totalorder %s860_s29, %s853_s21 }
  0x23   : > { %p857_p6 = pneg %p856_p5 }
  0x24   : > { %p863_p10 = por %p862_p7, %p861_p3 }
  0x26   : > { %p864_p11 = pnand %p863_p10, %p857_p6 }
  0x28   : > { %867 = shalt.err (!%p864_p11)
}
  0x29   : > { %s997_s12 = smov 512   ;;  %s998_s26 = smov 256  }
  0x2a   : > { %s999_s9 = smov 16   ;;  %p207_p13 = scmp.lt.s32.totalorder %s994_s22, 5 }
  0x2b   : > { %752 = dma.hbm_to_vmem [thread:$0]  (!%p1115_p0), %s198_s7, 2048, %s200_s23, %s187_s27, %s997_s12, %s998_s26, %s999_s9  }
  0x2c   : > { %p208_p2 = pnand %p693_p1, %p207_p13 }
  0x2d   : > { %s1131_s13 = sand.u32 (!%p208_p2), 1, %s970_s16  }
  0x2e   : > { %211 = sbr.rel (%p208_p2) target bundleno = 315 (0x13b), region = 32  ;;  %s694_s21 = sshll.u32 (!%p208_p2), %s1131_s13, 7 }
  0x2f   : > { %s214_s14 = scalar_lea.sflag (!%p208_p2), [#allocation3], %s1131_s13  ;;  %s1135_s28 = scalar_lea.vmem (!%p208_p2), [#allocation2], %s694_s21 }
  0x33   : > { %953 = dma.done.wait (%p1092_p8), %s214_s14, 2048  }
  0x34   : > { %955 = vsyncadd (%p1092_p8), %s214_s14, 4294965248  ;;  %v1000_v0 = vmov 0   ;;  %v264_v1 = vld [vmem:[%s1135_s28 + $0x68] sm:$0xff]  ;;  %v266_v2 = vld [vmem:[%s1135_s28 + $0x78] sm:$0xff]  ;;  %vm361_vm0 = vcmask 523264   ;;  %s718_s14 = sshll.u32 %s978_s18, 1 }
  0x35   : > { %409 = vmatprep.mubr.bf16.mxu0 %v1000_v0  ;;  %439 = vmatprep.mubr.bf16.mxu1 %v1000_v0  ;;  %v263_v3 = vld [vmem:[%s1135_s28 + $0x60] sm:$0xff]  ;;  %v274_v4 = vpack.c.bf16 %v266_v2, %v264_v1  ;;  %v265_v5 = vld [vmem:[%s1135_s28 + $0x70] sm:$0xff]  ;;  %v260_v6 = vld [vmem:[%s1135_s28 + $0x48] sm:$0xff]  ;;  %s695_s30 = sshll.u32 %s1131_s13, 3  ;;  %s696_s24 = sshll.u32 %s1131_s13, 6 }
  0x36   : > { %833 = vset.pattern.permute.xlu0 %v1000_v0  ;;  %834 = vset.pattern.permute.xlu1 %v1000_v0  ;;  %v262_v7 = vld [vmem:[%s1135_s28 + $0x58] sm:$0xff]  ;;  %v273_v8 = vpack.c.bf16 %v265_v5, %v263_v3  ;;  %v259_v10 = vld [vmem:[%s1135_s28 + $0x40] sm:$0xff]  ;;  %v261_v11 = vld [vmem:[%s1135_s28 + $0x50] sm:$0xff]  ;;  %s239_s7 = scalar_lea.vmem [#allocation5], %s695_s30  ;;  %s1232_s12 = scalar_lea.vmem [#allocation6], %s696_s24 }
  0x37   : > { %v272_v9 = vpack.c.bf16 %v262_v7, %v260_v6  ;;  %v256_v12 = vld [vmem:[%s1135_s28 + $0x28] sm:$0xff]  ;;  %385 = vmatprep.subr.bf16.mxu0 %v274_v4  ;;  %735 = vmatprep.subr.bf16.mxu1 %v274_v4  ;;  %v258_v13 = vld [vmem:[%s1135_s28 + $0x38] sm:$0xff]  ;;  %v271_v14 = vpack.c.bf16 %v261_v11, %v259_v10  ;;  %v255_v15 = vld [vmem:[%s1135_s28 + $0x20] sm:$0xff]  ;;  %s545_s27 = sshll.u32 %s239_s7, 4  ;;  %s524_s26 = scalar_lea.sflag [#allocation4], %s1131_s13  ;;  %s1230_s27 = int_to_ptr.vmem [resolvable:$true] %s545_s27 }
  0x38   : > { %386 = vmatpush1.bf16.msra.mxu0 %v273_v8  ;;  %739 = vmatpush1.bf16.msra.mxu1 %v273_v8  ;;  %v257_v16 = vld [vmem:[%s1135_s28 + $0x30] sm:$0xff]  ;;  %v270_v17 = vpack.c.bf16 %v258_v13, %v256_v12  ;;  %v252_v18 = vld [vmem:[%s1135_s28 + $0x8] sm:$0xff]  ;;  %v254_v19 = vld [vmem:[%s1135_s28 + $0x18] sm:$0xff]  ;;  %s868_s9 = scalar_lea.vmem %s1230_s27, 128  ;;  %s1001_s21 = smov [#allocation5]  }
  0x39   : > { %387 = vmatprep.subr.bf16.mxu0 %v272_v9  ;;  %736 = vmatprep.subr.bf16.mxu1 %v272_v9  ;;  %v269_v20 = vpack.c.bf16 %v257_v16, %v255_v15  ;;  %v251_v21 = vld [vmem:[%s1135_s28] sm:$0xff]  ;;  %v268_v22 = vpack.c.bf16 %v254_v19, %v252_v18  ;;  %v253_v23 = vld [vmem:[%s1135_s28 + $0x10] sm:$0xff]  ;;  %v285_v27 = vld [vmem:[%s1335_s2 + $0x8] sm:$0xff]  ;;  %s719_s28 = sshll.u32 %s982_s19, 2  ;;  %p869_p8 = scmp.ne.s32.totalorder %s1230_s27, %s868_s9 }
  0x3a   : > { %v284_v24 = vld [vmem:[%s1335_s2] sm:$0xff]  ;;  %v286_v25 = vld [vmem:[%s1335_s2 + $0x10] sm:$0xff]  ;;  %v267_v26 = vpack.c.bf16 %v253_v23, %v251_v21  ;;  %v287_v28 = vld [vmem:[%s1335_s2 + $0x18] sm:$0xff]  ;;  %s541_s23 = sadd.s32 %s719_s28, %s718_s14  ;;  %s872_s28 = sshll.u32 %s1001_s21, 4  ;;  %s873_s28 = int_to_ptr.vmem [resolvable:$false] %s872_s28 }
  0x3b   : > { %295 = vperm.xlu0 %833, %v284_v24   ;;  %305 = vperm.xlu1 %834, %v286_v25   ;;  %v835_v29 = vld [vmem:[%s1334_s1] sm:$0xff]   ;;  %v836_v30 = vld [vmem:[%s1334_s1 + $0x18] sm:$0xff]   ;;  %v289_v32 = vld [vmem:[%s1335_s2 + $0x28] sm:$0xff]  ;;  %s720_s6 = sshll.u32 %s541_s23, 6  ;;  %p870_p0 = pnand %p869_p8, %p1096_p9 }
  0x3c   : > { %388 = vmatpush1.bf16.msra.mxu0 %v271_v14  ;;  %740 = vmatpush1.bf16.msra.mxu1 %v271_v14  ;;  %v288_v31 = vld [vmem:[%s1335_s2 + $0x20] sm:$0xff]  ;;  %v290_v33 = vld [vmem:[%s1335_s2 + $0x30] sm:$0xff]  ;;  %v291_v34 = vld [vmem:[%s1335_s2 + $0x38] sm:$0xff]  ;;  %s1228_s29 = scalar_lea.hbm %s1336_s3, %s720_s6  ;;  %s874_s30 = scalar_lea.vmem %s873_s28, 256 }
  0x3d   : > { %389 = vmatprep.subr.bf16.mxu0 %v270_v17  ;;  %737 = vmatprep.subr.bf16.mxu1 %v270_v17  ;;  %v837_v35 = vld [vmem:[%s1334_s1 + $0x8] sm:$0xff]   ;;  %v838_v36 = vld [vmem:[%s1334_s1 + $0x20] ss:$0 sps:$4 sm:$0xff]   ;;  %v839_v38 = vld [vmem:[%s1334_s1 + $0x10] sm:$0xff]   ;;  %p871_p1 = pneg %p870_p0  ;;  %p875_p4 = scmp.lt.s32.totalorder %s1230_s27, %s873_s28 }
  0x3e   : > { %v292_v37 = vld [vmem:[%s1335_s2 + $0x40] sm:$0xff]  ;;  %p876_p5 = scmp.lt.s32.totalorder %s874_s30, %s868_s9 }
  0x3f   : > { %300 = vperm.xlu0 %833, %v285_v27   ;;  %310 = vperm.xlu1 %834, %v287_v28  }
  0x40   : > { %390 = vmatpush1.bf16.msra.mxu0 %v269_v20  ;;  %741 = vmatpush1.bf16.msra.mxu1 %v269_v20  ;;  %p877_p6 = por %p876_p5, %p875_p4 }
  0x41   : > { %391 = vmatprep.subr.bf16.mxu0 %v268_v22  ;;  %738 = vmatprep.subr.bf16.mxu1 %v268_v22 }
  0x42   : > { %p878_p3 = pnand %p877_p6, %p871_p1 }
  0x43   : > { %315 = vperm.xlu0 %833, %v288_v31   ;;  %320 = vperm.xlu1 %834, %v289_v32  }
  0x44   : > { %392 = vmatpush1.bf16.msra.mxu0 %v267_v26  ;;  %742 = vmatpush1.bf16.msra.mxu1 %v267_v26 }
  0x47   : > { %702 = vmatmul.mubr.msk.bf16.vlgmr.msra.gmra.mxu0 %vm361_vm0, %v835_v29  ;;  %705 = vmatmul.mubr.msk.bf16.vlgmr.msra.gmra.mxu1 %vm361_vm0, %v836_v30 }
  0x48   : > { %419 = vmatprep.mubr.bf16.mxu0 %v1000_v0  ;;  %449 = vmatprep.mubr.bf16.mxu1 %v1000_v0 }
  0x49   : > { %325 = vperm.xlu0 %833, %v290_v33   ;;  %330 = vperm.xlu1 %834, %v291_v34  }
  0x4d   : > { %335 = vperm.xlu0 %833, %v292_v37  }
  0x4f   : > { %703 = vmatmul.mubr.msk.bf16.gmra.mxu0 %vm361_vm0, %v837_v35  ;;  %706 = vmatmul.mubr.msk.bf16.gmra.mxu1 %vm361_vm0, %v838_v36 }
  0x50   : > { %429 = vmatprep.mubr.bf16.mxu0 %v1000_v0 }
  0x57   : > { %704 = vmatmul.mubr.msk.bf16.gmra.mxu0 %vm361_vm0, %v839_v38 }
  0xb6   : > { %v296_v39 = vpop.permute.xlu0 %295  ;;  %v1211_v40 = vpop.permute.xlu1 %305 }
  0xba   : > { %v301_v41 = vpop.permute.xlu0 %300  ;;  %v1213_v42 = vpop.permute.xlu1 %310 }
  0xbe   : > { %v1215_v43 = vpop.permute.xlu0 %315  ;;  %v1217_v44 = vpop.permute.xlu1 %320 }
  0xc4   : > { %v326_v45 = vpop.permute.xlu0 %325  ;;  %v331_v49 = vpop.permute.xlu1 %330 }
 0x107   : > { %v411_v46 = vpop.f32.mrf.mxu0  ;;  %v441_v47 = vpop.f32.mrf.mxu1 }
 0x108   : > { %v442_v48 = vadd.f32 %v441_v47, %v326_v45  ;;  %v412_v52 = vadd.f32 %v411_v46, %v296_v39 }
 0x109   : > { %v413_v50 = vpop.f32.mrf.mxu0  ;;  %v443_v51 = vpop.f32.mrf.mxu1 }
 0x10a   : > { %v414_v53 = vadd.f32 %v413_v50, %v296_v39  ;;  %v444_v54 = vadd.f32 %v443_v51, %v326_v45 }
 0x10b   : > { %v415_v55 = vpop.f32.mrf.mxu0  ;;  %v445_v56 = vpop.f32.mrf.mxu1 }
 0x10c   : > { %v726_v57 = vpack.c.bf16 %v414_v53, %v412_v52  ;;  %v732_v58 = vpack.c.bf16 %v444_v54, %v442_v48  ;;  %v446_v59 = vadd.f32 %v445_v56, %v331_v49  ;;  %v416_v62 = vadd.f32 %v415_v55, %v301_v41 }
 0x10d   : > { %v417_v60 = vpop.f32.mrf.mxu0  ;;  %v447_v61 = vpop.f32.mrf.mxu1 }
 0x10e   : > { %520 = vst [vmem:[%s1232_s12 + $0x28] sm:$0xff] %v732_v58  ;;  %v418_v63 = vadd.f32 %v417_v60, %v301_v41  ;;  %v448_v0 = vadd.f32 %v447_v61, %v331_v49  ;;  %466 = vst [vmem:[%s239_s7] sm:$0xff] %v726_v57 }
 0x10f   : > { %v421_v1 = vpop.f32.mrf.mxu0  ;;  %v451_v2 = vpop.f32.mrf.mxu1 }
 0x110   : > { %881 = shalt.err (!%p878_p3)
}
 0x111   : > { %s882_s23 = scalar_lea.hbm %s1228_s29, 128  ;;  %s886_s7 = scalar_lea.hbm %s1336_s3, 512 }
 0x112   : > { %p883_p7 = scmp.ne.s32.totalorder %s1228_s29, %s882_s23  ;;  %p887_p13 = scmp.lt.s32.totalorder %s1228_s29, %s1336_s3 }
 0x113   : > { %p888_p2 = scmp.lt.s32.totalorder %s886_s7, %s882_s23 }
 0x114   : > { %p884_p10 = pnand %p883_p7, %p1096_p9 }
 0x115   : > { %p889_p8 = por %p888_p2, %p887_p13 }
 0x116   : > { %p885_p11 = pneg %p884_p10 }
 0x118   : > { %p890_p0 = pnand %p889_p8, %p885_p11 }
 0x11a   : > { %893 = shalt.err (!%p890_p0)
}
 0x11b   : > { %745 = dma.vmem_to_hbm [thread:$0]  (%p1096_p9), %s1230_s27, 128, %s1228_s29, %s524_s26   ;;  %v336_v3 = vpop.permute.xlu0 %335  ;;  %v727_v4 = vpack.c.bf16 %v418_v63, %v416_v62  ;;  %v733_v5 = vpack.c.bf16 %v448_v0, %v446_v59  ;;  %v423_v6 = vpop.f32.mrf.mxu0  ;;  %v422_v8 = vadd.f32 %v421_v1, %v1211_v40 }
 0x11c   : > { %v453_v7 = vpop.f32.mrf.mxu1  ;;  %v452_v9 = vadd.f32 %v451_v2, %v336_v3  ;;  %v424_v10 = vadd.f32 %v423_v6, %v1211_v40  ;;  %s722_s27 = sshll.u32 %s982_s19, 5  ;;  %s560_s26 = sshll.u32 %s1232_s12, 4  ;;  %s1271_s26 = int_to_ptr.vmem [resolvable:$true] %s560_s26 }
 0x11d   : > { %515 = vst [vmem:[%s1232_s12] sm:$0xff] %v727_v4  ;;  %521 = vst [vmem:[%s1232_s12 + $0x30] sm:$0xff] %v733_v5  ;;  %v454_v11 = vadd.f32 %v453_v7, %v336_v3  ;;  %v425_v12 = vpop.f32.mrf.mxu0  ;;  %s557_s29 = sadd.s32 %s722_s27, %s718_s14  ;;  %s529_s21 = scalar_lea.sflag [#allocation7], %s1131_s13 }
 0x11e   : > { %v455_v13 = vpop.f32.mrf.mxu1  ;;  %v728_v14 = vpack.c.bf16 %v424_v10, %v422_v8  ;;  %v426_v18 = vadd.f32 %v425_v12, %v1213_v42  ;;  %s723_s9 = sshll.u32 %s557_s29, 6  ;;  %s894_s28 = scalar_lea.vmem %s1271_s26, 1024 }
 0x11f   : > { %v734_v15 = vpack.c.bf16 %v454_v11, %v452_v9  ;;  %v427_v16 = vpop.f32.mrf.mxu0  ;;  %s1279_s14 = scalar_lea.hbm %s1337_s4, %s723_s9  ;;  %p895_p1 = scmp.ne.s32.totalorder %s1271_s26, %s894_s28 }
 0x120   : > { %v456_v17 = vpop.f32.mrf.mxu1  ;;  %516 = vst [vmem:[%s1232_s12 + $0x8] sm:$0xff] %v728_v14  ;;  %v428_v19 = vadd.f32 %v427_v16, %v1213_v42  ;;  %s1002_s30 = smov [#allocation6]  }
 0x121   : > { %522 = vst [vmem:[%s1232_s12 + $0x38] sm:$0xff] %v734_v15  ;;  %v431_v20 = vpop.f32.mrf.mxu0  ;;  %p896_p4 = pnand %p895_p1, %p1096_p9  ;;  %s898_s23 = sshll.u32 %s1002_s30, 4  ;;  %s899_s23 = int_to_ptr.vmem [resolvable:$false] %s898_s23 }
 0x122   : > { %v729_v21 = vpack.c.bf16 %v428_v19, %v426_v18  ;;  %v432_v23 = vadd.f32 %v431_v20, %v1215_v43  ;;  %s900_s24 = scalar_lea.vmem %s899_s23, 2048  ;;  %p901_p6 = scmp.lt.s32.totalorder %s1271_s26, %s899_s23 }
 0x123   : > { %v433_v22 = vpop.f32.mrf.mxu0  ;;  %p897_p5 = pneg %p896_p4  ;;  %p902_p3 = scmp.lt.s32.totalorder %s900_s24, %s894_s28 }
 0x124   : > { %517 = vst [vmem:[%s1232_s12 + $0x10] sm:$0xff] %v729_v21  ;;  %v434_v24 = vadd.f32 %v433_v22, %v1215_v43 }
 0x125   : > { %v435_v25 = vpop.f32.mrf.mxu0  ;;  %p903_p7 = por %p902_p3, %p901_p6 }
 0x126   : > { %v730_v26 = vpack.c.bf16 %v434_v24, %v432_v23  ;;  %v436_v28 = vadd.f32 %v435_v25, %v1217_v44 }
 0x127   : > { %v437_v27 = vpop.f32.mrf.mxu0  ;;  %p904_p10 = pnand %p903_p7, %p897_p5 }
 0x128   : > { %518 = vst [vmem:[%s1232_s12 + $0x18] sm:$0xff] %v730_v26  ;;  %v438_v29 = vadd.f32 %v437_v27, %v1217_v44 }
 0x12a   : > { %v731_v30 = vpack.c.bf16 %v438_v29, %v436_v28 }
 0x12c   : > { %519 = vst [vmem:[%s1232_s12 + $0x20] sm:$0xff] %v731_v30 }
 0x12d   : > { %907 = shalt.err (!%p904_p10)
}
 0x12e   : > { %s908_s12 = scalar_lea.hbm %s1279_s14, 1024  ;;  %s912_s11 = scalar_lea.hbm %s1337_s4, 4096 }
 0x12f   : > { %p909_p11 = scmp.ne.s32.totalorder %s1279_s14, %s908_s12  ;;  %p913_p8 = scmp.lt.s32.totalorder %s1279_s14, %s1337_s4 }
 0x130   : > { %p914_p0 = scmp.lt.s32.totalorder %s912_s11, %s908_s12 }
 0x131   : > { %p910_p13 = pnand %p909_p11, %p1096_p9 }
 0x132   : > { %p915_p1 = por %p914_p0, %p913_p8 }
 0x133   : > { %p911_p2 = pneg %p910_p13 }
 0x135   : > { %p916_p4 = pnand %p915_p1, %p911_p2 }
 0x137   : > { %919 = shalt.err (!%p916_p4)
}
 0x138   : > { %s1003_s29 = smov 128   ;;  %s1004_s9 = smov 256  }
 0x139   : > { %s1005_s18 = smov 8  }
 0x13a   : > { %746 = dma.vmem_to_hbm [thread:$0]  (%p1096_p9), %s1271_s26, 1024, %s1279_s14, %s529_s21, %s1003_s29, %s1004_s9, %s1005_s18  }
 0x13b PF: > { %p761_p5 = scmp.ge.s32.totalorder %s994_s22, 2  ;;  %s575_s19 = sand.u32 1, %s966_s15  }
 0x13c   : > { %s576_s28 = scalar_lea.sflag [#allocation4], %s575_s19 }
 0x13d   : > { %p754_p6 = pnand %p761_p5, %p1102_p12 }
 0x13f   : > { %p755_p3 = pneg %p754_p6 }
 0x141   : > { %957 = dma.done.wait (%p755_p3), %s576_s28, 128  }
 0x142   : > { %959 = vsyncadd (%p755_p3), %s576_s28, 4294967168  ;;  %s585_s30 = scalar_lea.sflag [#allocation7], %s575_s19 }
 0x143   : > { %961 = dma.done.wait (%p755_p3), %s585_s30, 1024  }
 0x144   : > { %963 = vsyncadd (%p755_p3), %s585_s30, 4294966272  ;;  %s24_s22 = sadd.s32 1, %s994_s22   ;;  %s1349_s19 = sld [smem:[#allocation11_spill]] }
 0x145   : > { %p21_p7 = scmp.ge.s32.totalorder %s24_s22, 6   ;;  %s1350_s5 = sld [smem:[#allocation12_spill]] }
 0x146   : > { %s1351_s21 = sld [smem:[#allocation13_spill]]  ;;  %s1352_s15 = smov %s970_s16 }
 0x147   : > { %s1353_s16 = smov %s974_s17  ;;  %s1354_s17 = smov %s1109_s10 }
 0x148   : > { %s1355_s18 = smov %s986_s20  ;;  %23 = sbr.rel (!%p21_p7) target bundleno = 9 (0x9), region = 94 }
 0x14b   : > { %s1356_s20 = smov %s1350_s5 }
 0x14d   :  { %590 = vsyncpa [#allocation3], 1 }
 0x14e   :  { %592 = vsyncpa [#allocation3 + $0x1], 1 }
 0x14f   :  { %593 = vsyncpa [#allocation4], 1 }
 0x150   :  { %595 = vsyncpa [#allocation4 + $0x1], 1 }
 0x151   :  { %596 = vsyncpa [#allocation7], 1 }
 0x152   :  { %598 = vsyncpa [#allocation7 + $0x1], 1 }

</bundles_post_ra>
